<compile_context>
chip_gen: v7x
topology: tpu7x:2x2x1
jax: 0.10.0
libtpu: 0.0.40
codegen_flags: <defaults>
</compile_context>

<pallas_src>
import jax
import jax.numpy as jnp
from jax.experimental import pallas as pl
from jax.experimental.pallas import tpu as pltpu

NOISE_SCALE = 0.1


def _round_up(x, m):
    return (x + m - 1) // m * m


def _pick_batch_tile(b):
    """Batch tile: large enough to amortize per-grid-step overhead, >=2 grid steps whenever
    possible (so v7x's 2 TensorCores both get work), capped so the double-buffered working
    set stays tiny relative to VMEM on every generation (v5e/v6e 128 MiB, v7x 64 MiB)."""
    if b <= 8:
        return b                                   # one tile; block dim == full array dim is legal
    return min(_round_up(-(-b // 2), 8), 1024)     # ceil(b/2), 8-sublane aligned, cap 1024


def _wrapper_kernel(cur_ref, nxt_ref, temp_ref, eps_ref,
                    w1_ref, w1t_ref, b1_ref, w2_ref, b2_ref,
                    wmu_ref, bmu_ref, wlv_ref, blv_ref,
                    mu_ref, lv_ref, pred_ref):
    """One batch tile per grid step; all weights VMEM-resident (constant index_map)."""
    wdt = w1_ref.dtype    # f32 by default; bf16 weights supported (matmuls accumulate in f32)

    # --- model body layer 1: K-fused cur|next matmul (MXU) + rank-1 temperature term (VPU) ---
    x = jnp.concatenate([cur_ref[...], nxt_ref[...]], axis=1)          # (tb, 2d)
    h = jnp.dot(x.astype(wdt), w1_ref[...], preferred_element_type=jnp.float32)
    h = h + temp_ref[...] * w1t_ref[...].astype(jnp.float32)           # (tb,1)*(1,H) broadcast
    h = h + b1_ref[...].astype(jnp.float32)
    h = jnp.maximum(h, 0.0)

    # --- model body layer 2 -> latent ---
    latent = jnp.dot(h.astype(wdt), w2_ref[...], preferred_element_type=jnp.float32)
    latent = latent + b2_ref[...].astype(jnp.float32)

    # --- mu / log_var heads (each a single tiny MXU pass at d=24) ---
    mu = jnp.dot(latent.astype(wdt), wmu_ref[...], preferred_element_type=jnp.float32)
    mu = mu + bmu_ref[...].astype(jnp.float32)
    lv = jnp.dot(latent.astype(wdt), wlv_ref[...], preferred_element_type=jnp.float32)
    log_var = jnp.minimum(lv + blv_ref[...].astype(jnp.float32), 10.0)  # torch.clamp(max=10)

    # --- reparameterize: pred = mu + (noise_scale * eps) * exp(log_var)  (EUP exp, f32) ---
    std = jnp.exp(log_var)
    pred = mu + (NOISE_SCALE * eps_ref[...]) * std

    mu_ref[...] = mu
    lv_ref[...] = log_var
    pred_ref[...] = pred


@jax.jit
def model_wrapper_forward(current_state, next_state, temperature, eps, params):
    """Reshape-only glue in JAX (no pads, no concat, no slices); all compute in one Pallas call."""
    w1, w1t, b1, w2, b2, wmu, bmu, wlv, blv = params
    b = current_state.shape[0]

    cur = current_state.reshape(b, -1).astype(jnp.float32)
    nxt = next_state.reshape(b, -1).astype(jnp.float32)
    temp = temperature.reshape(b, -1).astype(jnp.float32)               # (B, 1)
    epsf = eps.reshape(b, -1).astype(jnp.float32)
    d = cur.shape[1]                                                    # logical data dim (24)
    assert w1.shape[0] == 2 * d and wmu.shape == (d, d)

    tb = _pick_batch_tile(b)
    grid = (pl.cdiv(b, tb),)   # partial last tile: OOB input rows are garbage but rows are
                               # independent (no cross-row reduction) and boundary writes are masked

    act_spec = pl.BlockSpec((tb, d), lambda i: (i, 0))
    temp_spec = pl.BlockSpec((tb, 1), lambda i: (i, 0))
    out_spec = pl.BlockSpec((tb, d), lambda i: (i, 0))

    def resident(w):           # weights: fetched once, stay in VMEM across all grid steps
        return pl.BlockSpec(w.shape, lambda i: (0, 0))

    out_sds = jax.ShapeDtypeStruct((b, d), jnp.float32)
    mu, log_var, pred = pl.pallas_call(
        _wrapper_kernel,
        out_shape=(out_sds, out_sds, out_sds),
        grid=grid,
        in_specs=[act_spec, act_spec, temp_spec, act_spec,
                  resident(w1), resident(w1t), resident(b1),
                  resident(w2), resident(b2),
                  resident(wmu), resident(bmu), resident(wlv), resident(blv)],
        out_specs=(out_spec, out_spec, out_spec),
        compiler_params=pltpu.CompilerParams(dimension_semantics=("parallel",)),
    )(cur, nxt, temp, epsf, w1, w1t, b1, w2, b2, wmu, bmu, wlv, blv)

    return {"mu": mu, "log_var": log_var, "pred": pred}


def init_logical_params(key, data_dim, hidden_dim):
    """Synthetic PyTorch-style uniform(-1/sqrt(fan_in), 1/sqrt(fan_in)) init (no checkpoint)."""
    input_dim = 2 * data_dim + 1
    ks = jax.random.split(key, 8)

    def lin(kw, kb, fan_in, fan_out):
        bound = 1.0 / float(fan_in) ** 0.5
        w = jax.random.uniform(kw, (fan_in, fan_out), jnp.float32, -bound, bound)
        bias = jax.random.uniform(kb, (1, fan_out), jnp.float32, -bound, bound)
        return w, bias

    w1, b1 = lin(ks[0], ks[1], input_dim, hidden_dim)     # model layer 1
    w2, b2 = lin(ks[2], ks[3], hidden_dim, data_dim)      # model layer 2 -> latent
    wmu, bmu = lin(ks[4], ks[5], data_dim, data_dim)      # self.mu
    wlv, blv = lin(ks[6], ks[7], data_dim, data_dim)      # self.log_var
    return (w1, b1, w2, b2, wmu, bmu, wlv, blv)


def prep_params(logical_params, *, param_dtype=jnp.float32):
    """Split W1 rows by input source (current|next vs temperature). No lane padding is done:
    Mosaic pads small K/N internally inside the MXU with no extra HBM traffic.

    param_dtype=jnp.bfloat16 halves weight DMA / resident VMEM on v6e/v7x (elementwise math
    stays f32 in-kernel); default f32 keeps tight agreement with the HIGHEST-precision reference.
    """
    w1, b1, w2, b2, wmu, bmu, wlv, blv = logical_params
    d = wmu.shape[0]
    assert w1.shape[0] == 2 * d + 1
    w1cn = w1[:2 * d]          # current|next rows of W1   (2d, H)
    w1t = w1[2 * d:]           # temperature row of W1     (1, H)
    return tuple(p.astype(param_dtype)
                 for p in (w1cn, w1t, b1, w2, b2, wmu, bmu, wlv, blv))


def reference_forward(current_state, next_state, temperature, eps, logical_params):
    """Pure-JAX reference mirroring the PyTorch forward (for correctness check)."""
    w1, b1, w2, b2, wmu, bmu, wlv, blv = logical_params
    b = current_state.shape[0]
    hp = jax.lax.Precision.HIGHEST
    cond = jnp.concatenate([current_state.reshape(b, -1), next_state.reshape(b, -1),
                            temperature.reshape(b, -1)], axis=1)
    h = jnp.maximum(jnp.dot(cond, w1, precision=hp) + b1, 0.0)
    latent = jnp.dot(h, w2, precision=hp) + b2
    mu = jnp.dot(latent, wmu, precision=hp) + bmu
    log_var = jnp.minimum(jnp.dot(latent, wlv, precision=hp) + blv, 10.0)
    pred = mu + (NOISE_SCALE * eps) * jnp.exp(log_var)
    return {"mu": mu, "log_var": log_var, "pred": pred}


if __name__ == "__main__":
    # Small shapes consistent with the forward: alanine-like, atom=8 -> data_dim=24
    batch = 8
    atoms = 8
    data_dim = atoms * 3                  # 24
    hidden_dim = 32

    key = jax.random.PRNGKey(0)
    k_cur, k_next, k_temp, k_eps, k_param, k_more = jax.random.split(key, 6)

    current_state = jax.random.normal(k_cur, (batch, atoms, 3), jnp.float32)
    next_state = jax.random.normal(k_next, (batch, atoms, 3), jnp.float32)
    temperature = jax.random.uniform(k_temp, (batch, 1), jnp.float32) * 300.0 + 300.0
    eps = jax.random.normal(k_eps, (batch, data_dim), jnp.float32)    # stands in for randn_like

    logical = init_logical_params(k_param, data_dim, hidden_dim)
    params = prep_params(logical)         # f32; pass param_dtype=jnp.bfloat16 on v6e/v7x

    out = model_wrapper_forward(current_state, next_state, temperature, eps, params)
    jax.block_until_ready(out)

    ref = reference_forward(current_state, next_state, temperature, eps, logical)
    for name in ("mu", "log_var", "pred"):
        assert out[name].shape == (batch, data_dim)
        assert bool(jnp.allclose(out[name], ref[name], rtol=5e-3, atol=5e-3)), name
    assert bool(jnp.all(out["log_var"] <= 10.0))

    # Second check: non-divisible batch -> multi-step grid (tb=16, grid=2) + masked partial tile.
    b2 = 20
    kc, kn, kt, ke = jax.random.split(k_more, 4)
    cur2 = jax.random.normal(kc, (b2, atoms, 3), jnp.float32)
    nxt2 = jax.random.normal(kn, (b2, atoms, 3), jnp.float32)
    temp2 = jax.random.uniform(kt, (b2, 1), jnp.float32) * 300.0 + 300.0
    eps2 = jax.random.normal(ke, (b2, data_dim), jnp.float32)
    out2 = model_wrapper_forward(cur2, nxt2, temp2, eps2, params)
    jax.block_until_ready(out2)
    ref2 = reference_forward(cur2, nxt2, temp2, eps2, logical)
    for name in ("mu", "log_var", "pred"):
        assert out2[name].shape == (b2, data_dim)
        assert bool(jnp.allclose(out2[name], ref2[name], rtol=5e-3, atol=5e-3)), name

    print("KERNEL_OK")
</pallas_src>

<mosaic_0001>
module attributes {stable_mosaic.version = 11 : i64} {
  func.func @_wrapper_kernel(%arg0: i32, %arg1: memref<8x24xf32, #tpu.memory_space<vmem>>, %arg2: memref<8x24xf32, #tpu.memory_space<vmem>>, %arg3: memref<8x1xf32, #tpu.memory_space<vmem>>, %arg4: memref<8x24xf32, #tpu.memory_space<vmem>>, %arg5: memref<48x32xf32, #tpu.memory_space<vmem>>, %arg6: memref<1x32xf32, #tpu.memory_space<vmem>>, %arg7: memref<1x32xf32, #tpu.memory_space<vmem>>, %arg8: memref<32x24xf32, #tpu.memory_space<vmem>>, %arg9: memref<1x24xf32, #tpu.memory_space<vmem>>, %arg10: memref<24x24xf32, #tpu.memory_space<vmem>>, %arg11: memref<1x24xf32, #tpu.memory_space<vmem>>, %arg12: memref<24x24xf32, #tpu.memory_space<vmem>>, %arg13: memref<1x24xf32, #tpu.memory_space<vmem>>, %arg14: memref<8x24xf32, #tpu.memory_space<vmem>>, %arg15: memref<8x24xf32, #tpu.memory_space<vmem>>, %arg16: memref<8x24xf32, #tpu.memory_space<vmem>>) attributes {dimension_semantics = [#tpu.dimension_semantics<parallel>], iteration_bounds = array<i64: 1>, scalar_prefetch = 0 : i64, scratch_operands = 0 : i64, tpu.core_type = #tpu.core_type<tc>, window_params = [{transform_indices = @transform_0, window_bounds = array<i64: 8, 24>}, {transform_indices = @transform_1, window_bounds = array<i64: 8, 24>}, {transform_indices = @transform_2, window_bounds = array<i64: 8, 1>}, {transform_indices = @transform_3, window_bounds = array<i64: 8, 24>}, {pipeline_mode = #tpu.pipeline_mode<synchronous>, transform_indices = @transform_4, window_bounds = array<i64: 48, 32>}, {pipeline_mode = #tpu.pipeline_mode<synchronous>, transform_indices = @transform_5, window_bounds = array<i64: 1, 32>}, {pipeline_mode = #tpu.pipeline_mode<synchronous>, transform_indices = @transform_6, window_bounds = array<i64: 1, 32>}, {pipeline_mode = #tpu.pipeline_mode<synchronous>, transform_indices = @transform_7, window_bounds = array<i64: 32, 24>}, {pipeline_mode = #tpu.pipeline_mode<synchronous>, transform_indices = @transform_8, window_bounds = array<i64: 1, 24>}, {pipeline_mode = #tpu.pipeline_mode<synchronous>, transform_indices = @transform_9, window_bounds = array<i64: 24, 24>}, {pipeline_mode = #tpu.pipeline_mode<synchronous>, transform_indices = @transform_10, window_bounds = array<i64: 1, 24>}, {pipeline_mode = #tpu.pipeline_mode<synchronous>, transform_indices = @transform_11, window_bounds = array<i64: 24, 24>}, {pipeline_mode = #tpu.pipeline_mode<synchronous>, transform_indices = @transform_12, window_bounds = array<i64: 1, 24>}, {transform_indices = @transform_13, window_bounds = array<i64: 8, 24>}, {transform_indices = @transform_14, window_bounds = array<i64: 8, 24>}, {transform_indices = @transform_15, window_bounds = array<i64: 8, 24>}]} {
    %c0 = arith.constant 0 : index
    %c0_0 = arith.constant 0 : index
    %0 = vector.load %arg1[%c0, %c0_0] : memref<8x24xf32, #tpu.memory_space<vmem>>, vector<8x24xf32>
    %c0_1 = arith.constant 0 : index
    %c0_2 = arith.constant 0 : index
    %1 = vector.load %arg2[%c0_1, %c0_2] : memref<8x24xf32, #tpu.memory_space<vmem>>, vector<8x24xf32>
    %2 = tpu.concatenate %0, %1 in 1 : vector<8x24xf32>, vector<8x24xf32> -> vector<8x48xf32>
    %c0_3 = arith.constant 0 : index
    %c0_4 = arith.constant 0 : index
    %3 = vector.load %arg5[%c0_3, %c0_4] : memref<48x32xf32, #tpu.memory_space<vmem>>, vector<48x32xf32>
    %cst = arith.constant dense<0.000000e+00> : vector<8x32xf32>
    %4 = tpu.matmul %2, %3, %cst {dimension_numbers = #tpu.dot_dimension_numbers<[1], [0], [0], [1], [0, 0, 1, 1], [], []>} : vector<8x48xf32>, vector<48x32xf32>, vector<8x32xf32> -> vector<8x32xf32>
    %c0_5 = arith.constant 0 : index
    %c0_6 = arith.constant 0 : index
    %5 = vector.load %arg3[%c0_5, %c0_6] : memref<8x1xf32, #tpu.memory_space<vmem>>, vector<8x1xf32>
    %c0_7 = arith.constant 0 : index
    %c0_8 = arith.constant 0 : index
    %6 = vector.load %arg6[%c0_7, %c0_8] : memref<1x32xf32, #tpu.memory_space<vmem>>, vector<1x32xf32>
    %7 = vector.broadcast %5 : vector<8x1xf32> to vector<8x32xf32>
    %8 = vector.broadcast %6 : vector<1x32xf32> to vector<8x32xf32>
    %9 = arith.mulf %7, %8 : vector<8x32xf32>
    %10 = arith.addf %4, %9 : vector<8x32xf32>
    %c0_9 = arith.constant 0 : index
    %c0_10 = arith.constant 0 : index
    %11 = vector.load %arg7[%c0_9, %c0_10] : memref<1x32xf32, #tpu.memory_space<vmem>>, vector<1x32xf32>
    %12 = vector.broadcast %11 : vector<1x32xf32> to vector<8x32xf32>
    %13 = arith.addf %10, %12 : vector<8x32xf32>
    %cst_11 = arith.constant 0.000000e+00 : f32
    %14 = vector.broadcast %cst_11 : f32 to vector<8x32xf32>
    %15 = arith.maximumf %13, %14 : vector<8x32xf32>
    %c0_12 = arith.constant 0 : index
    %c0_13 = arith.constant 0 : index
    %16 = vector.load %arg8[%c0_12, %c0_13] : memref<32x24xf32, #tpu.memory_space<vmem>>, vector<32x24xf32>
    %cst_14 = arith.constant dense<0.000000e+00> : vector<8x24xf32>
    %17 = tpu.matmul %15, %16, %cst_14 {dimension_numbers = #tpu.dot_dimension_numbers<[1], [0], [0], [1], [0, 0, 1, 1], [], []>} : vector<8x32xf32>, vector<32x24xf32>, vector<8x24xf32> -> vector<8x24xf32>
    %c0_15 = arith.constant 0 : index
    %c0_16 = arith.constant 0 : index
    %18 = vector.load %arg9[%c0_15, %c0_16] : memref<1x24xf32, #tpu.memory_space<vmem>>, vector<1x24xf32>
    %19 = vector.broadcast %18 : vector<1x24xf32> to vector<8x24xf32>
    %20 = arith.addf %17, %19 : vector<8x24xf32>
    %c0_17 = arith.constant 0 : index
    %c0_18 = arith.constant 0 : index
    %21 = vector.load %arg10[%c0_17, %c0_18] : memref<24x24xf32, #tpu.memory_space<vmem>>, vector<24x24xf32>
    %cst_19 = arith.constant dense<0.000000e+00> : vector<8x24xf32>
    %22 = tpu.matmul %20, %21, %cst_19 {dimension_numbers = #tpu.dot_dimension_numbers<[1], [0], [0], [1], [0, 0, 1, 1], [], []>} : vector<8x24xf32>, vector<24x24xf32>, vector<8x24xf32> -> vector<8x24xf32>
    %c0_20 = arith.constant 0 : index
    %c0_21 = arith.constant 0 : index
    %23 = vector.load %arg11[%c0_20, %c0_21] : memref<1x24xf32, #tpu.memory_space<vmem>>, vector<1x24xf32>
    %24 = vector.broadcast %23 : vector<1x24xf32> to vector<8x24xf32>
    %25 = arith.addf %22, %24 : vector<8x24xf32>
    %c0_22 = arith.constant 0 : index
    %c0_23 = arith.constant 0 : index
    %26 = vector.load %arg12[%c0_22, %c0_23] : memref<24x24xf32, #tpu.memory_space<vmem>>, vector<24x24xf32>
    %cst_24 = arith.constant dense<0.000000e+00> : vector<8x24xf32>
    %27 = tpu.matmul %20, %26, %cst_24 {dimension_numbers = #tpu.dot_dimension_numbers<[1], [0], [0], [1], [0, 0, 1, 1], [], []>} : vector<8x24xf32>, vector<24x24xf32>, vector<8x24xf32> -> vector<8x24xf32>
    %c0_25 = arith.constant 0 : index
    %c0_26 = arith.constant 0 : index
    %28 = vector.load %arg13[%c0_25, %c0_26] : memref<1x24xf32, #tpu.memory_space<vmem>>, vector<1x24xf32>
    %29 = vector.broadcast %28 : vector<1x24xf32> to vector<8x24xf32>
    %30 = arith.addf %27, %29 : vector<8x24xf32>
    %cst_27 = arith.constant 1.000000e+01 : f32
    %31 = vector.broadcast %cst_27 : f32 to vector<8x24xf32>
    %32 = arith.minimumf %30, %31 : vector<8x24xf32>
    %33 = math.exp %32 : vector<8x24xf32>
    %c0_28 = arith.constant 0 : index
    %c0_29 = arith.constant 0 : index
    %34 = vector.load %arg4[%c0_28, %c0_29] : memref<8x24xf32, #tpu.memory_space<vmem>>, vector<8x24xf32>
    %cst_30 = arith.constant 1.000000e-01 : f32
    %35 = vector.broadcast %cst_30 : f32 to vector<8x24xf32>
    %36 = arith.mulf %35, %34 : vector<8x24xf32>
    %37 = arith.mulf %36, %33 : vector<8x24xf32>
    %38 = arith.addf %25, %37 : vector<8x24xf32>
    %c0_31 = arith.constant 0 : index
    %c0_32 = arith.constant 0 : index
    %39 = vector.load %arg14[%c0_31, %c0_32] : memref<8x24xf32, #tpu.memory_space<vmem>>, vector<8x24xf32>
    tpu.vector_store %arg14[%c0_31, %c0_32], %25 {strides = array<i32>} : memref<8x24xf32, #tpu.memory_space<vmem>>, vector<8x24xf32>,
    %c0_33 = arith.constant 0 : index
    %c0_34 = arith.constant 0 : index
    %40 = vector.load %arg15[%c0_33, %c0_34] : memref<8x24xf32, #tpu.memory_space<vmem>>, vector<8x24xf32>
    tpu.vector_store %arg15[%c0_33, %c0_34], %32 {strides = array<i32>} : memref<8x24xf32, #tpu.memory_space<vmem>>, vector<8x24xf32>,
    %c0_35 = arith.constant 0 : index
    %c0_36 = arith.constant 0 : index
    %41 = vector.load %arg16[%c0_35, %c0_36] : memref<8x24xf32, #tpu.memory_space<vmem>>, vector<8x24xf32>
    tpu.vector_store %arg16[%c0_35, %c0_36], %38 {strides = array<i32>} : memref<8x24xf32, #tpu.memory_space<vmem>>, vector<8x24xf32>,
    return
  }
  func.func @transform_0(%arg0: i32) -> (i32, i32) {
    %c0_i32 = arith.constant 0 : i32
    %c0_i32_0 = arith.constant 0 : i32
    return %arg0, %c0_i32 : i32, i32
  }
  func.func @transform_1(%arg0: i32) -> (i32, i32) {
    %c0_i32 = arith.constant 0 : i32
    %c0_i32_0 = arith.constant 0 : i32
    return %arg0, %c0_i32 : i32, i32
  }
  func.func @transform_2(%arg0: i32) -> (i32, i32) {
    %c0_i32 = arith.constant 0 : i32
    %c0_i32_0 = arith.constant 0 : i32
    return %arg0, %c0_i32 : i32, i32
  }
  func.func @transform_3(%arg0: i32) -> (i32, i32) {
    %c0_i32 = arith.constant 0 : i32
    %c0_i32_0 = arith.constant 0 : i32
    return %arg0, %c0_i32 : i32, i32
  }
  func.func @transform_4(%arg0: i32) -> (i32, i32) {
    %c0_i32 = arith.constant 0 : i32
    %c0_i32_0 = arith.constant 0 : i32
    %c0_i32_1 = arith.constant 0 : i32
    return %c0_i32, %c0_i32_0 : i32, i32
  }
  func.func @transform_5(%arg0: i32) -> (i32, i32) {
    %c0_i32 = arith.constant 0 : i32
    %c0_i32_0 = arith.constant 0 : i32
    %c0_i32_1 = arith.constant 0 : i32
    return %c0_i32, %c0_i32_0 : i32, i32
  }
  func.func @transform_6(%arg0: i32) -> (i32, i32) {
    %c0_i32 = arith.constant 0 : i32
    %c0_i32_0 = arith.constant 0 : i32
    %c0_i32_1 = arith.constant 0 : i32
    return %c0_i32, %c0_i32_0 : i32, i32
  }
  func.func @transform_7(%arg0: i32) -> (i32, i32) {
    %c0_i32 = arith.constant 0 : i32
    %c0_i32_0 = arith.constant 0 : i32
    %c0_i32_1 = arith.constant 0 : i32
    return %c0_i32, %c0_i32_0 : i32, i32
  }
  func.func @transform_8(%arg0: i32) -> (i32, i32) {
    %c0_i32 = arith.constant 0 : i32
    %c0_i32_0 = arith.constant 0 : i32
    %c0_i32_1 = arith.constant 0 : i32
    return %c0_i32, %c0_i32_0 : i32, i32
  }
  func.func @transform_9(%arg0: i32) -> (i32, i32) {
    %c0_i32 = arith.constant 0 : i32
    %c0_i32_0 = arith.constant 0 : i32
    %c0_i32_1 = arith.constant 0 : i32
    return %c0_i32, %c0_i32_0 : i32, i32
  }
  func.func @transform_10(%arg0: i32) -> (i32, i32) {
    %c0_i32 = arith.constant 0 : i32
    %c0_i32_0 = arith.constant 0 : i32
    %c0_i32_1 = arith.constant 0 : i32
    return %c0_i32, %c0_i32_0 : i32, i32
  }
  func.func @transform_11(%arg0: i32) -> (i32, i32) {
    %c0_i32 = arith.constant 0 : i32
    %c0_i32_0 = arith.constant 0 : i32
    %c0_i32_1 = arith.constant 0 : i32
    return %c0_i32, %c0_i32_0 : i32, i32
  }
  func.func @transform_12(%arg0: i32) -> (i32, i32) {
    %c0_i32 = arith.constant 0 : i32
    %c0_i32_0 = arith.constant 0 : i32
    %c0_i32_1 = arith.constant 0 : i32
    return %c0_i32, %c0_i32_0 : i32, i32
  }
  func.func @transform_13(%arg0: i32) -> (i32, i32) {
    %c0_i32 = arith.constant 0 : i32
    %c0_i32_0 = arith.constant 0 : i32
    return %arg0, %c0_i32 : i32, i32
  }
  func.func @transform_14(%arg0: i32) -> (i32, i32) {
    %c0_i32 = arith.constant 0 : i32
    %c0_i32_0 = arith.constant 0 : i32
    return %arg0, %c0_i32 : i32, i32
  }
  func.func @transform_15(%arg0: i32) -> (i32, i32) {
    %c0_i32 = arith.constant 0 : i32
    %c0_i32_0 = arith.constant 0 : i32
    return %arg0, %c0_i32 : i32, i32
  }
}

</mosaic_0001>

<bundles_post_ra>
// kernel: model_wrapper_forward.1
= control target key start
LH: loop header
LB: loop body
LE: loop exit
PB: predicated region body
PF: predicated region fallthrough
CT: control target
= control target key end

     0   :  { %21 = vsyncpa [#allocation3], 0  ;;  %s634_s24 = smov 24   ;;  %v635_v3 = vmov 0.0|0.0   ;;  %vm636_vm0 = vmmov 0   ;;  %v637_v7 = vmov 0.0   ;;  %s843_s0 = inlined_call_operand.vmem [shape: f32[8,24], index: 0, kind: input, shape index: {}]   ;;  %s844_s1 = inlined_call_operand.vmem [shape: f32[8,24], index: 1, kind: input, shape index: {}]   ;;  %s845_s2 = inlined_call_operand.vmem [shape: f32[8,1], index: 2, kind: input, shape index: {}]   ;;  %s846_s3 = inlined_call_operand.vmem [shape: f32[8,24], index: 3, kind: input, shape index: {}]   ;;  %s847_s4 = inlined_call_operand.vmem [shape: f32[48,32], index: 4, kind: input, shape index: {}]   ;;  %s848_s5 = inlined_call_operand.vmem [shape: f32[1,32], index: 5, kind: input, shape index: {}]   ;;  %s849_s6 = inlined_call_operand.vmem [shape: f32[1,32], index: 6, kind: input, shape index: {}]   ;;  %s850_s7 = inlined_call_operand.vmem [shape: f32[32,24], index: 7, kind: input, shape index: {}]   ;;  %s851_s8 = inlined_call_operand.vmem [shape: f32[1,24], index: 8, kind: input, shape index: {}]   ;;  %s852_s9 = inlined_call_operand.vmem [shape: f32[24,24], index: 9, kind: input, shape index: {}]   ;;  %s853_s10 = inlined_call_operand.vmem [shape: f32[1,24], index: 10, kind: input, shape index: {}]   ;;  %s854_s11 = inlined_call_operand.vmem [shape: f32[24,24], index: 11, kind: input, shape index: {}]   ;;  %s855_s12 = inlined_call_operand.vmem [shape: f32[1,24], index: 12, kind: input, shape index: {}]   ;;  %s856_s13 = inlined_call_operand.hbm [shape: f32[8,24], index: 13, kind: output, shape index: {0}]   ;;  %s857_s14 = inlined_call_operand.hbm [shape: f32[8,24], index: 14, kind: output, shape index: {1}]   ;;  %s858_s15 = inlined_call_operand.hbm [shape: f32[8,24], index: 15, kind: output, shape index: {2}]  }
   0x1   :  { %v50_v0 = vld [vmem:[%s844_s1] sm:$0xff]  ;;  %v58_v2 = vld [vmem:[%s847_s4 + $0x8] sm:$0xff]  ;;  %532 = vmatprep.subr.bf16.mxu0 %v635_v3  ;;  %v59_v5 = vld [vmem:[%s847_s4 + $0x10] sm:$0xff]  ;;  %500 = vmatprep.mubr.msk.f32.mxu0 %vm636_vm0, %v637_v7  ;;  %v638_v10 = vmov 0  }
   0x2   :  { %v57_v1 = vld [vmem:[%s847_s4] sm:$0xff]  ;;  %52 = vrot.lane.b32.xlu0 %v50_v0, %s634_s24  ;;  %v60_v6 = vld [vmem:[%s847_s4 + $0x18] sm:$0xff]  ;;  %541 = vmatprep.subr.bf16.mxu1 %v635_v3 }
   0x3   :  { %v533_v4 = vpack.c.bf16 %v58_v2, %v57_v1  ;;  %v63_v8 = vld [vmem:[%s845_s2] sm:$0xff]  ;;  %v536_v9 = vpack.c.bf16 %v60_v6, %v59_v5  ;;  %561 = vset.pattern.permute.xlu0 %v638_v10 }
   0x5   :  { %534 = vmatpush3.bf16.msra.mxu0 %v533_v4 }
   0x6   :  { %22 = vsyncpa [#allocation5], 0  ;;  %535 = vmatprep.subr.bf16.mxu0 %v635_v3  ;;  %v61_v11 = vld [vmem:[%s847_s4 + $0x20] sm:$0xff]  ;;  %v62_v12 = vld [vmem:[%s847_s4 + $0x28] sm:$0xff]  ;;  %511 = vmatprep.mubr.msk.f32.mxu1 %vm636_vm0, %v637_v7  ;;  %vm55_vm1 = vcmask 195584   ;;  %vm77_vm2 = vcmask 392192  }
   0x7   :  { %67 = vperm.xlu0 %561, %v63_v8   ;;  %v539_v13 = vpack.c.bf16 %v62_v12, %v61_v11  ;;  %v49_v14 = vld [vmem:[%s843_s0] sm:$0xff]  ;;  %v161_v18 = vld [vmem:[%s850_s7 + $0x8] sm:$0xff]  ;;  %v162_v20 = vld [vmem:[%s850_s7 + $0x10] sm:$0xff]  ;;  %vm171_vm3 = vcmask 261120  }
   0x8   :  { %v160_v17 = vld [vmem:[%s850_s7] sm:$0xff]  ;;  %v163_v21 = vld [vmem:[%s850_s7 + $0x18] sm:$0xff]  ;;  %v329_v24 = vld [vmem:[%s854_s11 + $0x8] sm:$0xff] }
   0x9   :  { %537 = vmatpush3.bf16.msra.mxu0 %v536_v9  ;;  %v542_v19 = vpack.c.bf16 %v161_v18, %v160_v17  ;;  %v545_v22 = vpack.c.bf16 %v163_v21, %v162_v20  ;;  %v328_v23 = vld [vmem:[%s854_s11] sm:$0xff]  ;;  %v246_v34 = vld [vmem:[%s852_s9 + $0x8] sm:$0xff]  ;;  %v330_v38 = vld [vmem:[%s854_s11 + $0x10] sm:$0xff] }
   0xa   :  { %538 = vmatprep.subr.bf16.mxu0 %v635_v3  ;;  %v551_v25 = vpack.c.bf16 %v329_v24, %v328_v23  ;;  %v459_v26 = vld [vmem:[%s848_s5] ss:$0 sm:$0xff]  ;;  %v247_v39 = vld [vmem:[%s852_s9 + $0x10] sm:$0xff] }
   0xb   :  { %543 = vmatpush3.bf16.msra.mxu1 %v542_v19  ;;  %v461_v30 = vld [vmem:[%s849_s6] ss:$0 sm:$0xff] }
   0xc   :  { %544 = vmatprep.subr.bf16.mxu1 %v635_v3  ;;  %v245_v33 = vld [vmem:[%s852_s9] sm:$0xff]  ;;  %s639_s9 = smov [#allocation2]  }
   0xd   :  { %540 = vmatpush3.bf16.msra.mxu0 %v539_v13  ;;  %v548_v36 = vpack.c.bf16 %v246_v34, %v245_v33  ;;  %v462_v40 = vld [vmem:[%s851_s8] ss:$0 sm:$0xff]  ;;  %s424_s25 = sshll.u32 %s639_s9, 4  ;;  %s640_s8 = smov [#allocation4]   ;;  %s425_s25 = int_to_ptr.vmem [resolvable:$true] %s424_s25 }
   0xe   :  { %550 = vmatprep.subr.bf16.mxu0 %v635_v3  ;;  %v464_v44 = vld [vmem:[%s853_s10] ss:$0 sm:$0xff]  ;;  %s434_s26 = sshll.u32 %s640_s8, 4  ;;  %s564_s10 = scalar_lea.vmem %s425_s25, 128  ;;  %s435_s26 = int_to_ptr.vmem [resolvable:$true] %s434_s26 }
   0xf   :  { %546 = vmatpush3.bf16.msra.mxu1 %v545_v22  ;;  %v466_v45 = vld [vmem:[%s855_s12] ss:$0 sm:$0xff]  ;;  %p565_p0 = scmp.ne.s32.totalorder %s425_s25, %s564_s10  ;;  %p569_p1 = scmp.lt.s32.totalorder %s425_s25, %s425_s25 }
  0x10   :  { %547 = vmatprep.subr.bf16.mxu1 %v635_v3  ;;  %p570_p2 = scmp.lt.s32.totalorder %s564_s10, %s564_s10 }
  0x12   :  { %p571_p3 = por %p570_p2, %p569_p1 }
  0x14   :  { %p572_p4 = pnand %p571_p3, %p565_p0 }
  0x74   :  { %v53_v15 = vpop.permute.xlu0 %52 }
  0x75   :  { %v56_v16 = vsel %vm55_vm1, %v49_v14, %v53_v15 }
  0x76   :  { %501 = vmatmul.mubr.msk.f32.vlgmr.msra.gmra.mrb[0].mxu0 %vm77_vm2, %v56_v16 }
  0x77   :  { %529 = vmatprep.mubr.msk.f32.mxu0 %vm636_vm0, %v637_v7  ;;  %552 = vmatpush3.bf16.msra.mxu0 %v551_v25 }
  0x78   :  { %527 = vmatprep.subr.mxu0 %v637_v7 }
  0x7b   :  { %528 = vmatpush3.msra.mxu0 %v330_v38 }
  0x86   :  { %v68_v27 = vpop.permute.xlu0 %67 }
  0x87   :  { %v76_v28 = vmul.f32 %v459_v26, %v68_v27 }
 0x149   :  { %v147_v29 = vpop.f32.mrb[0].mxu0 }
 0x14a   :  { %v148_v31 = vadd.f32 %v147_v29, %v76_v28  ;;  %v502_v32 = vpop.f32.mrb[1].mxu0 }
 0x14c   :  { %v158_v35 = vadd.f32 %v461_v30, %v148_v31 }
 0x14e   :  { %v159_v37 = vmax.f32 %v158_v35, 0.0 }
 0x150   :  { %512 = vmatmul.mubr.msk.f32.vlgmr.msra.gmra.mrb[0].mxu1 %vm171_vm3, %v159_v37 }
 0x151   :  { %549 = vmatpush3.bf16.msra.mxu1 %v548_v36  ;;  %520 = vmatprep.mubr.msk.f32.mxu1 %vm636_vm0, %v637_v7 }
 0x152   :  { %518 = vmatprep.subr.mxu1 %v637_v7 }
 0x155   :  { %519 = vmatpush3.msra.mxu1 %v247_v39 }
 0x223   :  { %v241_v41 = vpop.f32.mrb[0].mxu1 }
 0x224   :  { %v242_v42 = vadd.f32 %v462_v40, %v241_v41  ;;  %v513_v43 = vpop.f32.mrb[1].mxu1 }
 0x226   :  { %521 = vmatmul.mubr.msk.f32.vlgmr.msra.gmra.mrb[2].mxu1 %vm55_vm1, %v242_v42  ;;  %530 = vmatmul.mubr.msk.f32.vlgmr.msra.gmra.mrb[2].mxu0 %vm55_vm1, %v242_v42 }
 0x2f9   :  { %v324_v46 = vpop.f32.mrb[2].mxu1  ;;  %v404_v47 = vpop.f32.mrb[2].mxu0 }
 0x2fa   :  { %v325_v48 = vadd.f32 %v464_v44, %v324_v46  ;;  %v405_v49 = vadd.f32 %v466_v45, %v404_v47  ;;  %v522_v50 = vpop.f32.mrb[3].mxu1  ;;  %v531_v51 = vpop.f32.mrb[3].mxu0 }
 0x2fc   :  { %415 = vst.msk [vmem:[#allocation2] sm:$0xff] %vm55_vm1, %v325_v48  ;;  %v408_v52 = vmin.f32 %v405_v49, 10.0 }
 0x2fd   :  { %575 = shalt.err (!%p572_p4)
}
 0x2fe   :  { %s576_s28 = scalar_lea.hbm %s856_s13, 128 }
 0x2ff   :  { %p577_p5 = scmp.ne.s32.totalorder %s856_s13, %s576_s28  ;;  %p580_p6 = scmp.lt.u32.totalorder %s576_s28, %s856_s13 }
 0x301   :  { %p582_p7 = pnand %p580_p6, %p577_p5 }
 0x303   :  { %585 = shalt.err (!%p582_p7)
}
 0x304   :  { %427 = dma.vmem_to_hbm [thread:$0]  %s425_s25, 128, %s856_s13, [#allocation3]   ;;  %v409_v53 = vmul.f32 1.442695, %v408_v52  ;;  %416 = vst.msk [vmem:[#allocation4] sm:$0xff] %vm55_vm1, %v408_v52 }
 0x305   :  { %s586_s18 = scalar_lea.vmem %s435_s26, 128  ;;  %p591_p9 = scmp.lt.s32.totalorder %s435_s26, %s435_s26 }
 0x306   :  { %p587_p8 = scmp.ne.s32.totalorder %s435_s26, %s586_s18  ;;  %p592_p10 = scmp.lt.s32.totalorder %s586_s18, %s586_s18 }
 0x308   :  { %p593_p11 = por %p592_p10, %p591_p9 }
 0x30a   :  { %p594_p12 = pnand %p593_p11, %p587_p8 }
 0x30c   :  { %597 = shalt.err (!%p594_p12)
}
 0x30d   :  { %s598_s5 = scalar_lea.hbm %s857_s14, 128 }
 0x30e   :  { %p599_p13 = scmp.ne.s32.totalorder %s857_s14, %s598_s5  ;;  %p602_p0 = scmp.lt.u32.totalorder %s598_s5, %s857_s14 }
 0x310   :  { %p604_p1 = pnand %p602_p0, %p599_p13 }
 0x312   :  { %607 = shalt.err (!%p604_p1)
}
 0x313   :  { %437 = dma.vmem_to_hbm [thread:$0]  %s435_s26, 128, %s857_s14, [#allocation5]   ;;  %562 = vpow2.f32 %v409_v53  ;;  %v411_v54 = vld [vmem:[%s846_s3] sm:$0xff] }
 0x314   :  { %v412_v55 = vmul.f32 0.1, %v411_v54  ;;  %s641_s11 = smov [#allocation6]  }
 0x315   :  { %s444_s24 = sshll.u32 %s641_s11, 4  ;;  %s445_s24 = int_to_ptr.vmem [resolvable:$true] %s444_s24 }
 0x316   :  { %s608_s9 = scalar_lea.vmem %s445_s24, 128  ;;  %p613_p3 = scmp.lt.s32.totalorder %s445_s24, %s445_s24 }
 0x317   :  { %p609_p2 = scmp.ne.s32.totalorder %s445_s24, %s608_s9  ;;  %p614_p4 = scmp.lt.s32.totalorder %s608_s9, %s608_s9 }
 0x319   :  { %p615_p5 = por %p614_p4, %p613_p3 }
 0x31b   :  { %p616_p6 = pnand %p615_p5, %p609_p2 }
 0x31d   :  { %v563_v56 = vpop.eup %562 }
 0x31e   :  { %v413_v57 = vmul.f32 %v563_v56, %v412_v55 }
 0x320   :  { %v414_v58 = vadd.f32 %v413_v57, %v325_v48 }
 0x322   :  { %417 = vst.msk [vmem:[#allocation6] sm:$0xff] %vm55_vm1, %v414_v58 }
 0x323   :  { %619 = shalt.err (!%p616_p6)
}
 0x324   :  { %s620_s3 = scalar_lea.hbm %s858_s15, 128 }
 0x325   :  { %p621_p7 = scmp.ne.s32.totalorder %s858_s15, %s620_s3  ;;  %p624_p8 = scmp.lt.u32.totalorder %s620_s3, %s858_s15 }
 0x327   :  { %p626_p9 = pnand %p624_p8, %p621_p7 }
 0x329   :  { %629 = shalt.err (!%p626_p9)
}
 0x32a   :  { %447 = dma.vmem_to_hbm [thread:$0]  %s445_s24, 128, %s858_s15, [#allocation5]  }
 0x32b   :  { %630 = dma.done.wait [#allocation3], 128  }
 0x32c   :  { %631 = vsyncadd [#allocation3], 4294967168 }
 0x32d   :  { %632 = dma.done.wait [#allocation5], 256  }
 0x32e   :  { %633 = vsyncadd [#allocation5], 4294967040 }
 0x32f   :  { %457 = vsyncpa [#allocation3], 1 }
 0x330   :  { %458 = vsyncpa [#allocation5], 1 }

</bundles_post_ra>
